<compile_context>
chip_gen: v7x
topology: tpu7x:2x2x1
jax: 0.10.0
libtpu: 0.0.40
codegen_flags: <defaults>
</compile_context>

<pallas_src>
import jax
import jax.numpy as jnp
from jax.experimental import pallas as pl
from jax.experimental.pallas import tpu as pltpu


def _round_up(x, m):
    return (x + m - 1) // m * m


# ---------------------------------------------------------------------------
# One-time parameter packing (call once per parameter update, NOT per forward).
# ---------------------------------------------------------------------------
def pack_params(params, compute_dtype=jnp.bfloat16):
    """Pack actor/critic weights into fused, MXU-friendly resident tensors.

    Returns dict with:
      w1 : (num_inputs, 2H)  [a_w1 | v_w1]                       (compute_dtype)
      w2 : (2H, 2H)          block-diag [[a_w2, 0], [0, v_w2]]   (compute_dtype)
      b  : (4, 2H) f32       row0 = [a_b1 | v_b1], row1 = [a_b2 | v_b2],
                             row2 = [0 | v_w3],    row3[0] = v_b3
    """
    H = params["a_w2"].shape[1]
    H2 = 2 * H
    w1 = jnp.concatenate([params["a_w1"], params["v_w1"]], axis=1).astype(compute_dtype)
    zed = jnp.zeros((H, H), jnp.float32)
    w2 = jnp.concatenate(
        [jnp.concatenate([params["a_w2"], zed], axis=1),
         jnp.concatenate([zed, params["v_w2"]], axis=1)], axis=0).astype(compute_dtype)
    b1 = jnp.concatenate([params["a_b1"], params["v_b1"]], axis=1)
    b2 = jnp.concatenate([params["a_b2"], params["v_b2"]], axis=1)
    w3pad = jnp.concatenate(
        [jnp.zeros((1, H), jnp.float32),
         params["v_w3"].reshape(1, H).astype(jnp.float32)], axis=1)
    b3row = jnp.zeros((1, H2), jnp.float32).at[0, 0].set(
        params["v_b3"].reshape(-1)[0].astype(jnp.float32))
    bpack = jnp.concatenate([b1, b2, w3pad, b3row], axis=0).astype(jnp.float32)
    return dict(w1=w1, w2=w2, b=bpack)


# ---------------------------------------------------------------------------
# Kernel: one batch tile of the fused actor/critic forward.
# ---------------------------------------------------------------------------
def _ffpolicy_kernel(x_ref, w1_ref, w2_ref, b_ref, actor_ref, value_ref):
    """
    x_ref     : (TB, num_inputs)   input tile (f32 or bf16)
    w1_ref    : (num_inputs, 2H)   [a_w1 | v_w1]                   (VMEM-resident)
    w2_ref    : (2H, 2H)           block-diag [[a_w2,0],[0,v_w2]]  (VMEM-resident)
    b_ref     : (4, 2H) f32        packed biases + v_w3 + v_b3     (VMEM-resident)
    actor_ref : (TB, H)            actor hidden output (I/O dtype)
    value_ref : (TB, 1)  f32       critic value output
    """
    h = actor_ref.shape[1]
    w_dtype = w1_ref.dtype

    x = x_ref[...].astype(w_dtype)
    b = b_ref[...]                    # (4, 2H) f32
    b1 = b[0:1, :]
    b2 = b[1:2, :]
    w3pad = b[2:3, :]                 # zeros on actor half, v_w3 on critic half
    b3 = b[3:4, 0:1]

    # layer 1: fused actor|critic, lane-dense (TB, in) @ (in, 2H); f32 accumulation
    h1 = jnp.tanh(
        jnp.dot(x, w1_ref[...], preferred_element_type=jnp.float32) + b1)
    # layer 2: block-diagonal fused (TB, 2H) @ (2H, 2H) -- one full 128x128 tile
    h2 = jnp.tanh(
        jnp.dot(h1.astype(w_dtype), w2_ref[...],
                preferred_element_type=jnp.float32) + b2)

    # actor hidden: lanes [:H] of the fused activation
    actor_ref[...] = h2[:, :h].astype(actor_ref.dtype)

    # value head: N=1 matmul replaced by VPU mul + XLU lane reduce (w3pad is zero on
    # the actor half, so full-width product selects the critic half). Kept in f32.
    value_ref[...] = (jnp.sum(h2 * w3pad, axis=-1, keepdims=True)
                      + b3).astype(value_ref.dtype)


# ---------------------------------------------------------------------------
# Forward wrapper.
# ---------------------------------------------------------------------------
def ffpolicy_forward(inputs, states, masks, packed, *,
                     block_b=1024, target_steps=4):
    """Returns (value, x, states) matching the FFPolicy/MLP forward semantics.

    `packed` = pack_params(raw_params, compute_dtype); cast `inputs` to the same
    dtype upstream (bf16 recommended on all generations) to halve the input DMA.
    """
    B, num_inputs = inputs.shape
    H2 = packed["w1"].shape[1]
    H = H2 // 2

    # >= target_steps grid steps (v7x has 2 TCs; also gives DMA/compute overlap),
    # capped at block_b for huge batches; sublane-aligned to 8. No explicit padding:
    # Pallas masks the partial edge block (rows are independent, OOB rows not stored).
    TB = min(block_b, max(8, _round_up(pl.cdiv(B, target_steps), 8)))
    grid = (pl.cdiv(B, TB),)

    w_itemsize = jnp.dtype(packed["w1"].dtype).itemsize
    x_itemsize = jnp.dtype(inputs.dtype).itemsize
    cost = pl.CostEstimate(
        flops=2 * B * (num_inputs * H2 + H2 * H2 + H2),
        transcendentals=2 * B * H2,
        bytes_accessed=(B * num_inputs * x_itemsize
                        + (num_inputs * H2 + H2 * H2) * w_itemsize
                        + 4 * H2 * 4
                        + B * H * x_itemsize + B * 4),
    )

    actor, value = pl.pallas_call(
        _ffpolicy_kernel,
        out_shape=(jax.ShapeDtypeStruct((B, H), inputs.dtype),     # actor hidden
                   jax.ShapeDtypeStruct((B, 1), jnp.float32)),     # critic value (f32)
        grid=grid,
        in_specs=[
            pl.BlockSpec((TB, num_inputs), lambda i: (i, 0)),      # batch-tiled input
            pl.BlockSpec((num_inputs, H2), lambda i: (0, 0)),      # resident weights
            pl.BlockSpec((H2, H2), lambda i: (0, 0)),
            pl.BlockSpec((4, H2), lambda i: (0, 0)),
        ],
        out_specs=(pl.BlockSpec((TB, H), lambda i: (i, 0)),
                   pl.BlockSpec((TB, 1), lambda i: (i, 0))),
        compiler_params=pltpu.CompilerParams(
            dimension_semantics=("parallel",)),
        cost_estimate=cost,
    )(inputs, packed["w1"], packed["w2"], packed["b"])

    # masks unused (no recurrent state); states passed through unchanged.
    return value, actor, states


def init_params(key, num_inputs, hidden):
    ks = jax.random.split(key, 5)

    def lin(kw, fan_in, fan_out):
        w = jax.random.normal(kw, (fan_in, fan_out), jnp.float32) * 0.05
        b = jnp.zeros((1, fan_out), jnp.float32)
        return w, b

    a_w1, a_b1 = lin(ks[0], num_inputs, hidden)
    a_w2, a_b2 = lin(ks[1], hidden, hidden)
    v_w1, v_b1 = lin(ks[2], num_inputs, hidden)
    v_w2, v_b2 = lin(ks[3], hidden, hidden)
    v_w3, v_b3 = lin(ks[4], hidden, 1)
    return dict(a_w1=a_w1, a_b1=a_b1, a_w2=a_w2, a_b2=a_b2,
                v_w1=v_w1, v_b1=v_b1, v_w2=v_w2, v_b2=v_b2,
                v_w3=v_w3, v_b3=v_b3)


if __name__ == "__main__":
    key = jax.random.PRNGKey(0)
    num_inputs, hidden = 32, 64

    k_in, k_in2, k_p = jax.random.split(key, 3)
    params = init_params(k_p, num_inputs, hidden)

    # one-time packing, hoisted out of the forward call (per-param-update cost only)
    packed_f32 = jax.tree_util.tree_map(
        jax.block_until_ready, pack_params(params, compute_dtype=jnp.float32))
    packed_bf16 = jax.tree_util.tree_map(
        jax.block_until_ready, pack_params(params, compute_dtype=jnp.bfloat16))

    def ref(inp):
        h = jnp.tanh(inp @ params["v_w1"] + params["v_b1"])
        h = jnp.tanh(h @ params["v_w2"] + params["v_b2"])
        v = h @ params["v_w3"] + params["v_b3"]
        a = jnp.tanh(inp @ params["a_w1"] + params["a_b1"])
        a = jnp.tanh(a @ params["a_w2"] + params["a_b2"])
        return v, a

    fwd = jax.jit(ffpolicy_forward, static_argnames=("block_b", "target_steps"))

    # --- small batch, f32, single tile ---
    B = 8
    inputs = jax.random.normal(k_in, (B, num_inputs), jnp.float32)
    states = jnp.zeros((B, 1), jnp.float32)   # no GRU -> pass-through
    masks = jnp.ones((B, 1), jnp.float32)
    value, x, states_out = fwd(inputs, states, masks, packed_f32)
    jax.block_until_ready((value, x, states_out))
    v_ref, a_ref = ref(inputs)
    assert value.shape == (B, 1) and x.shape == (B, hidden)
    assert jnp.allclose(value, v_ref, atol=1e-5), "value mismatch (f32, B=8)"
    assert jnp.allclose(x, a_ref, atol=1e-5), "actor mismatch (f32, B=8)"

    # --- larger, non-divisible batch: multi-step grid + partial edge block, no padding ---
    B2 = 200
    inputs2 = jax.random.normal(k_in2, (B2, num_inputs), jnp.float32)
    states2 = jnp.zeros((B2, 1), jnp.float32)
    masks2 = jnp.ones((B2, 1), jnp.float32)
    value2, x2, _ = fwd(inputs2, states2, masks2, packed_f32)
    jax.block_until_ready((value2, x2))
    v_ref2, a_ref2 = ref(inputs2)
    assert value2.shape == (B2, 1) and x2.shape == (B2, hidden)
    assert jnp.allclose(value2, v_ref2, atol=1e-5), "value mismatch (f32, B=200)"
    assert jnp.allclose(x2, a_ref2, atol=1e-5), "actor mismatch (f32, B=200)"

    # --- bf16 I/O + MXU path (inputs cast upstream); f32 accumulation/tanh/value head ---
    inputs2_bf16 = inputs2.astype(jnp.bfloat16)
    value3, x3, _ = fwd(inputs2_bf16, states2, masks2, packed_bf16)
    jax.block_until_ready((value3, x3))
    assert value3.dtype == jnp.float32 and x3.dtype == jnp.bfloat16
    assert jnp.allclose(value3, v_ref2, atol=5e-2), "value mismatch (bf16)"
    assert jnp.allclose(x3.astype(jnp.float32), a_ref2, atol=5e-2), "actor mismatch (bf16)"

    print("KERNEL_OK")
</pallas_src>

<mosaic_0001>
module attributes {stable_mosaic.version = 11 : i64} {
  func.func @_ffpolicy_kernel(%arg0: i32, %arg1: memref<8x32xf32, #tpu.memory_space<vmem>>, %arg2: memref<32x128xf32, #tpu.memory_space<vmem>>, %arg3: memref<128x128xf32, #tpu.memory_space<vmem>>, %arg4: memref<4x128xf32, #tpu.memory_space<vmem>>, %arg5: memref<8x64xf32, #tpu.memory_space<vmem>>, %arg6: memref<8x1xf32, #tpu.memory_space<vmem>>) attributes {dimension_semantics = [#tpu.dimension_semantics<parallel>], iteration_bounds = array<i64: 1>, scalar_prefetch = 0 : i64, scratch_operands = 0 : i64, tpu.core_type = #tpu.core_type<tc>, window_params = [{transform_indices = @transform_0, window_bounds = array<i64: 8, 32>}, {pipeline_mode = #tpu.pipeline_mode<synchronous>, transform_indices = @transform_1, window_bounds = array<i64: 32, 128>}, {pipeline_mode = #tpu.pipeline_mode<synchronous>, transform_indices = @transform_2, window_bounds = array<i64: 128, 128>}, {pipeline_mode = #tpu.pipeline_mode<synchronous>, transform_indices = @transform_3, window_bounds = array<i64: 4, 128>}, {transform_indices = @transform_4, window_bounds = array<i64: 8, 64>}, {transform_indices = @transform_5, window_bounds = array<i64: 8, 1>}]} {
    %c0 = arith.constant 0 : index
    %c0_0 = arith.constant 0 : index
    %0 = vector.load %arg1[%c0, %c0_0] : memref<8x32xf32, #tpu.memory_space<vmem>>, vector<8x32xf32>
    %c0_1 = arith.constant 0 : index
    %c0_2 = arith.constant 0 : index
    %1 = vector.load %arg4[%c0_1, %c0_2] : memref<4x128xf32, #tpu.memory_space<vmem>>, vector<4x128xf32>
    %2 = vector.extract_strided_slice %1 {offsets = [0, 0], sizes = [1, 128], strides = [1, 1]} : vector<4x128xf32> to vector<1x128xf32>
    %3 = vector.extract_strided_slice %1 {offsets = [1, 0], sizes = [1, 128], strides = [1, 1]} : vector<4x128xf32> to vector<1x128xf32>
    %4 = vector.extract_strided_slice %1 {offsets = [2, 0], sizes = [1, 128], strides = [1, 1]} : vector<4x128xf32> to vector<1x128xf32>
    %5 = vector.extract_strided_slice %1 {offsets = [3, 0], sizes = [1, 1], strides = [1, 1]} : vector<4x128xf32> to vector<1x1xf32>
    %c0_3 = arith.constant 0 : index
    %c0_4 = arith.constant 0 : index
    %6 = vector.load %arg2[%c0_3, %c0_4] : memref<32x128xf32, #tpu.memory_space<vmem>>, vector<32x128xf32>
    %cst = arith.constant dense<0.000000e+00> : vector<8x128xf32>
    %7 = tpu.matmul %0, %6, %cst {dimension_numbers = #tpu.dot_dimension_numbers<[1], [0], [0], [1], [0, 0, 1, 1], [], []>} : vector<8x32xf32>, vector<32x128xf32>, vector<8x128xf32> -> vector<8x128xf32>
    %8 = vector.broadcast %2 : vector<1x128xf32> to vector<8x128xf32>
    %9 = arith.addf %7, %8 : vector<8x128xf32>
    %10 = math.tanh %9 : vector<8x128xf32>
    %c0_5 = arith.constant 0 : index
    %c0_6 = arith.constant 0 : index
    %11 = vector.load %arg3[%c0_5, %c0_6] : memref<128x128xf32, #tpu.memory_space<vmem>>, vector<128x128xf32>
    %cst_7 = arith.constant dense<0.000000e+00> : vector<8x128xf32>
    %12 = tpu.matmul %10, %11, %cst_7 {dimension_numbers = #tpu.dot_dimension_numbers<[1], [0], [0], [1], [0, 0, 1, 1], [], []>} : vector<8x128xf32>, vector<128x128xf32>, vector<8x128xf32> -> vector<8x128xf32>
    %13 = vector.broadcast %3 : vector<1x128xf32> to vector<8x128xf32>
    %14 = arith.addf %12, %13 : vector<8x128xf32>
    %15 = math.tanh %14 : vector<8x128xf32>
    %16 = vector.extract_strided_slice %15 {offsets = [0, 0], sizes = [8, 64], strides = [1, 1]} : vector<8x128xf32> to vector<8x64xf32>
    %c0_8 = arith.constant 0 : index
    %c0_9 = arith.constant 0 : index
    %17 = vector.load %arg5[%c0_8, %c0_9] : memref<8x64xf32, #tpu.memory_space<vmem>>, vector<8x64xf32>
    tpu.vector_store %arg5[%c0_8, %c0_9], %16 {strides = array<i32>} : memref<8x64xf32, #tpu.memory_space<vmem>>, vector<8x64xf32>,
    %18 = vector.broadcast %4 : vector<1x128xf32> to vector<8x128xf32>
    %19 = arith.mulf %15, %18 : vector<8x128xf32>
    %cst_10 = arith.constant dense<0.000000e+00> : vector<8xf32>
    %20 = vector.multi_reduction <add>, %19, %cst_10 [1] : vector<8x128xf32> to vector<8xf32>
    %21 = vector.shape_cast %20 : vector<8xf32> to vector<8x1xf32>
    %22 = vector.broadcast %5 : vector<1x1xf32> to vector<8x1xf32>
    %23 = arith.addf %21, %22 : vector<8x1xf32>
    %c0_11 = arith.constant 0 : index
    %c0_12 = arith.constant 0 : index
    %24 = vector.load %arg6[%c0_11, %c0_12] : memref<8x1xf32, #tpu.memory_space<vmem>>, vector<8x1xf32>
    tpu.vector_store %arg6[%c0_11, %c0_12], %23 {strides = array<i32>} : memref<8x1xf32, #tpu.memory_space<vmem>>, vector<8x1xf32>,
    return
  }
  func.func @transform_0(%arg0: i32) -> (i32, i32) {
    %c0_i32 = arith.constant 0 : i32
    %c0_i32_0 = arith.constant 0 : i32
    return %arg0, %c0_i32 : i32, i32
  }
  func.func @transform_1(%arg0: i32) -> (i32, i32) {
    %c0_i32 = arith.constant 0 : i32
    %c0_i32_0 = arith.constant 0 : i32
    %c0_i32_1 = arith.constant 0 : i32
    return %c0_i32, %c0_i32_0 : i32, i32
  }
  func.func @transform_2(%arg0: i32) -> (i32, i32) {
    %c0_i32 = arith.constant 0 : i32
    %c0_i32_0 = arith.constant 0 : i32
    %c0_i32_1 = arith.constant 0 : i32
    return %c0_i32, %c0_i32_0 : i32, i32
  }
  func.func @transform_3(%arg0: i32) -> (i32, i32) {
    %c0_i32 = arith.constant 0 : i32
    %c0_i32_0 = arith.constant 0 : i32
    %c0_i32_1 = arith.constant 0 : i32
    return %c0_i32, %c0_i32_0 : i32, i32
  }
  func.func @transform_4(%arg0: i32) -> (i32, i32) {
    %c0_i32 = arith.constant 0 : i32
    %c0_i32_0 = arith.constant 0 : i32
    return %arg0, %c0_i32 : i32, i32
  }
  func.func @transform_5(%arg0: i32) -> (i32, i32) {
    %c0_i32 = arith.constant 0 : i32
    %c0_i32_0 = arith.constant 0 : i32
    return %arg0, %c0_i32 : i32, i32
  }
}

</mosaic_0001>

<bundles_post_ra>
// kernel: ffpolicy_forward.1
= control target key start
LH: loop header
LB: loop body
LE: loop exit
PB: predicated region body
PF: predicated region fallthrough
CT: control target
= control target key end

     0   :  { %11 = vsyncpa [#allocation3], 0  ;;  %s526_s0 = inlined_call_operand.vmem [shape: f32[8,32], index: 0, kind: input, shape index: {}]   ;;  %s527_s1 = inlined_call_operand.hbm [shape: f32[32,128], index: 1, kind: input, shape index: {}]   ;;  %s528_s2 = inlined_call_operand.hbm [shape: f32[128,128], index: 2, kind: input, shape index: {}]   ;;  %s529_s3 = inlined_call_operand.vmem [shape: f32[4,128], index: 3, kind: input, shape index: {}]   ;;  %s530_s4 = inlined_call_operand.hbm [shape: f32[8,64], index: 4, kind: output, shape index: {0}]   ;;  %s531_s5 = inlined_call_operand.vmem [shape: f32[8,1], index: 5, kind: output, shape index: {1}]  }
   0x1   :  { %12 = vsyncpa [#allocation6], 0 }
   0x2   :  { %13 = vsyncpa [#allocation4], 0  ;;  %s443_s18 = smov [#allocation2]   ;;  %s371_s22 = scalar_lea.hbm %s527_s1, 512 }
   0x3   :  { %s21_s19 = sshll.u32 %s443_s18, 4  ;;  %p372_p0 = scmp.ne.s32.totalorder %s527_s1, %s371_s22  ;;  %s22_s19 = int_to_ptr.vmem [resolvable:$true] %s21_s19 }
   0x4   :  { %p375_p1 = scmp.lt.u32.totalorder %s371_s22, %s527_s1 }
   0x6   :  { %p377_p2 = pnand %p375_p1, %p372_p0 }
   0x8   :  { %380 = shalt.err (!%p377_p2)
}
   0x9   :  { %s381_s27 = scalar_lea.vmem %s22_s19, 512  ;;  %p386_p4 = scmp.lt.s32.totalorder %s22_s19, %s22_s19 }
   0xa   :  { %p382_p3 = scmp.ne.s32.totalorder %s22_s19, %s381_s27  ;;  %p387_p5 = scmp.lt.s32.totalorder %s381_s27, %s381_s27 }
   0xc   :  { %p388_p6 = por %p387_p5, %p386_p4 }
   0xe   :  { %p389_p7 = pnand %p388_p6, %p382_p3 }
  0x10   :  { %392 = shalt.err (!%p389_p7)
}
  0x11   :  { %s444_s28 = smov 128   ;;  %s445_s29 = smov 8  }
  0x12   :  { %27 = dma.hbm_to_vmem [thread:$0]  %s527_s1, 512, %s22_s19, [#allocation3], %s444_s28, %s444_s28, %s445_s29  }
  0x13   :  { %s446_s7 = smov [#allocation5]   ;;  %s393_s11 = scalar_lea.hbm %s528_s2, 2048 }
  0x14   :  { %s33_s8 = sshll.u32 %s446_s7, 4  ;;  %p394_p8 = scmp.ne.s32.totalorder %s528_s2, %s393_s11  ;;  %s34_s8 = int_to_ptr.vmem [resolvable:$true] %s33_s8 }
  0x15   :  { %p397_p9 = scmp.lt.u32.totalorder %s393_s11, %s528_s2 }
  0x17   :  { %p399_p10 = pnand %p397_p9, %p394_p8 }
  0x19   :  { %402 = shalt.err (!%p399_p10)
}
  0x1a   :  { %s403_s16 = scalar_lea.vmem %s34_s8, 2048  ;;  %p408_p12 = scmp.lt.s32.totalorder %s34_s8, %s34_s8 }
  0x1b   :  { %p404_p11 = scmp.ne.s32.totalorder %s34_s8, %s403_s16  ;;  %p409_p13 = scmp.lt.s32.totalorder %s403_s16, %s403_s16 }
  0x1d   :  { %p410_p0 = por %p409_p13, %p408_p12 }
  0x1f   :  { %p411_p1 = pnand %p410_p0, %p404_p11 }
  0x21   :  { %414 = shalt.err (!%p411_p1)
}
  0x22   :  { %39 = dma.hbm_to_vmem [thread:$0]  %s528_s2, 2048, %s34_s8, [#allocation6], %s444_s28, %s444_s28, %s445_s29  }
  0x23   :  { %437 = dma.done.wait [#allocation3], 512  }
  0x24   :  { %438 = vsyncadd [#allocation3], 4294966784 }
  0x25   :  { %439 = dma.done.wait [#allocation6], 2048  }
  0x26   :  { %440 = vsyncadd [#allocation6], 4294965248  ;;  %v447_v0 = vmov 0.0|0.0   ;;  %vm448_vm0 = vmmov 0   ;;  %v449_v1 = vmov 0.0   ;;  %v50_v2 = vld [vmem:[#allocation2] sm:$0xff]  ;;  %v54_v33 = vlaneseq }
  0x27   :  { %329 = vmatprep.subr.bf16.mxu0 %v447_v0  ;;  %291 = vmatprep.mubr.msk.f32.mxu0 %vm448_vm0, %v449_v1  ;;  %v51_v3 = vld [vmem:[#allocation2 + $0x8] sm:$0xff]  ;;  %v52_v4 = vld [vmem:[#allocation2 + $0x10] sm:$0xff]  ;;  %v53_v6 = vld [vmem:[#allocation2 + $0x18] sm:$0xff]  ;;  %vm58_vm1 = vcmask 261120   ;;  %vm224_vm2 = vcmask 523264  }
  0x28   :  { %335 = vmatprep.subr.bf16.mxu1 %v447_v0  ;;  %326 = vmatprep.mubr.msk.f32.mxu1 %vm448_vm0, %v449_v1  ;;  %v330_v5 = vpack.c.bf16 %v51_v3, %v50_v2  ;;  %v133_v7 = vld [vmem:[#allocation5] sm:$0xff]  ;;  %v134_v8 = vld [vmem:[#allocation5 + $0x8] sm:$0xff]  ;;  %v135_v9 = vld [vmem:[#allocation5 + $0x10] sm:$0xff]  ;;  %v333_v11 = vpack.c.bf16 %v53_v6, %v52_v4  ;;  %v55_v34 = vshrl.u32 %v54_v33, 7 }
  0x29   :  { %v136_v10 = vld [vmem:[#allocation5 + $0x18] sm:$0xff]  ;;  %v336_v12 = vpack.c.bf16 %v134_v8, %v133_v7  ;;  %v137_v14 = vld [vmem:[#allocation5 + $0x20] sm:$0xff]  ;;  %v138_v15 = vld [vmem:[#allocation5 + $0x28] sm:$0xff] }
  0x2a   :  { %331 = vmatpush3.bf16.msra.mxu0 %v330_v5  ;;  %v339_v13 = vpack.c.bf16 %v136_v10, %v135_v9  ;;  %v48_v16 = vld [vmem:[%s526_s0] sm:$0xff]  ;;  %v342_v17 = vpack.c.bf16 %v138_v15, %v137_v14  ;;  %v139_v18 = vld [vmem:[#allocation5 + $0x30] sm:$0xff]  ;;  %v140_v19 = vld [vmem:[#allocation5 + $0x38] sm:$0xff]  ;;  %v56_v35 = vsub.s32 0, %v55_v34  ;;  %v151_v42 = vsub.s32 1, %v55_v34 }
  0x2b   :  { %332 = vmatprep.subr.bf16.mxu0 %v447_v0  ;;  %337 = vmatpush3.bf16.msra.mxu1 %v336_v12  ;;  %v345_v20 = vpack.c.bf16 %v140_v19, %v139_v18  ;;  %v141_v21 = vld [vmem:[#allocation5 + $0x40] sm:$0xff]  ;;  %v142_v22 = vld [vmem:[#allocation5 + $0x48] sm:$0xff]  ;;  %v143_v24 = vld [vmem:[#allocation5 + $0x50] sm:$0xff]  ;;  %v228_v47 = vsub.s32 2, %v55_v34 }
  0x2c   :  { %338 = vmatprep.subr.bf16.mxu1 %v447_v0  ;;  %v348_v23 = vpack.c.bf16 %v142_v22, %v141_v21  ;;  %v144_v25 = vld [vmem:[#allocation5 + $0x58] sm:$0xff]  ;;  %v145_v27 = vld [vmem:[#allocation5 + $0x60] sm:$0xff]  ;;  %v146_v28 = vld [vmem:[#allocation5 + $0x68] sm:$0xff] }
  0x2d   :  { %v351_v26 = vpack.c.bf16 %v144_v25, %v143_v24  ;;  %v354_v29 = vpack.c.bf16 %v146_v28, %v145_v27  ;;  %v147_v30 = vld [vmem:[#allocation5 + $0x70] sm:$0xff]  ;;  %v148_v31 = vld [vmem:[#allocation5 + $0x78] sm:$0xff]  ;;  %v49_v36 = vld [vmem:[%s529_s3] sm:$0xf]  ;;  %s450_s3 = smov [#allocation7]  }
  0x2e   :  { %334 = vmatpush3.bf16.msra.mxu0 %v333_v11  ;;  %v357_v32 = vpack.c.bf16 %v148_v31, %v147_v30  ;;  %v57_v37 = vrot.slane %v49_v36, %v56_v35  ;;  %v152_v43 = vrot.slane %v49_v36, %v151_v42  ;;  %v229_v48 = vrot.slane %v49_v36, %v228_v47  ;;  %s246_s20 = sshll.u32 %s450_s3, 4  ;;  %s247_s20 = int_to_ptr.vmem [resolvable:$true] %s246_s20 }
  0x2f   :  { %340 = vmatpush3.bf16.msra.mxu1 %v339_v13  ;;  %s415_s21 = scalar_lea.vmem %s247_s20, 128  ;;  %p420_p3 = scmp.lt.s32.totalorder %s247_s20, %s247_s20 }
  0x30   :  { %341 = vmatprep.subr.bf16.mxu1 %v447_v0  ;;  %p416_p2 = scmp.ne.s32.totalorder %s247_s20, %s415_s21  ;;  %p421_p4 = scmp.lt.s32.totalorder %s415_s21, %s415_s21 }
  0x31   :  { %292 = vmatmul.mubr.msk.f32.vlgmr.msra.gmra.mrb[0].mxu0 %vm58_vm1, %v48_v16 }
  0x32   :  { %p422_p5 = por %p421_p4, %p420_p3 }
  0x33   :  { %343 = vmatpush3.bf16.msra.mxu1 %v342_v17 }
  0x34   :  { %344 = vmatprep.subr.bf16.mxu1 %v447_v0  ;;  %p423_p6 = pnand %p422_p5, %p416_p2 }
  0x37   :  { %346 = vmatpush3.bf16.msra.mxu1 %v345_v20 }
  0x38   :  { %347 = vmatprep.subr.bf16.mxu1 %v447_v0 }
  0x3b   :  { %349 = vmatpush3.bf16.msra.mxu1 %v348_v23 }
  0x3c   :  { %350 = vmatprep.subr.bf16.mxu1 %v447_v0 }
  0x3f   :  { %352 = vmatpush3.bf16.msra.mxu1 %v351_v26 }
  0x40   :  { %353 = vmatprep.subr.bf16.mxu1 %v447_v0 }
  0x43   :  { %355 = vmatpush3.bf16.msra.mxu1 %v354_v29 }
  0x44   :  { %356 = vmatprep.subr.bf16.mxu1 %v447_v0 }
  0x47   :  { %358 = vmatpush3.bf16.msra.mxu1 %v357_v32 }
 0x104   :  { %v128_v38 = vpop.f32.mrb[0].mxu0 }
 0x105   :  { %v129_v39 = vadd.f32 %v128_v38, %v57_v37  ;;  %v293_v40 = vpop.f32.mrb[1].mxu0 }
 0x107   :  { %367 = vtanh.f32 %v129_v39 }
 0x111   :  { %v368_v41 = vpop.eup %367 }
 0x112   :  { %327 = vmatmul.mubr.f32.vlgmr.msra.gmra.mrb[0].mxu1 %v368_v41 }
 0x1e5   :  { %v219_v44 = vpop.f32.mrb[0].mxu1 }
 0x1e6   :  { %v220_v45 = vadd.f32 %v219_v44, %v152_v43  ;;  %v328_v46 = vpop.f32.mrb[1].mxu1 }
 0x1e8   :  { %369 = vtanh.f32 %v220_v45 }
 0x1f2   :  { %v370_v49 = vpop.eup %369 }
 0x1f3   :  { %v230_v50 = vmul.f32 %v370_v49, %v229_v48  ;;  %225 = vst.msk [vmem:[#allocation7] sm:$0xff] %vm224_vm2, %v370_v49 }
 0x1f5   :  { %231 = vadd.xlane.f32.xlu0 %v230_v50 }
 0x1f6   :  { %426 = shalt.err (!%p423_p6)
}
 0x1f7   :  { %s427_s24 = scalar_lea.hbm %s530_s4, 128 }
 0x1f8   :  { %p428_p7 = scmp.ne.s32.totalorder %s530_s4, %s427_s24  ;;  %p431_p8 = scmp.lt.u32.totalorder %s427_s24, %s530_s4 }
 0x1fa   :  { %p433_p9 = pnand %p431_p8, %p428_p7 }
 0x1fc   :  { %436 = shalt.err (!%p433_p9)
}
 0x1fd   :  { %249 = dma.vmem_to_hbm [thread:$0]  %s247_s20, 128, %s530_s4, [#allocation4]   ;;  %v235_v51 = vsub.s32 3, %v55_v34  ;;  %vm238_vm3 = vcmask 7168  }
 0x1ff   :  { %v236_v52 = vrot.slane %v49_v36, %v235_v51 }
 0x282   :  { %v232_v53 = vpop.xlane.xlu0 %231 }
 0x283   :  { %v237_v54 = vadd.f32 %v236_v52, %v232_v53 }
 0x285   :  { %239 = vst.msk [vmem:[%s531_s5] sm:$0xff] %vm238_vm3, %v237_v54 }
 0x286   :  { %441 = dma.done.wait [#allocation4], 128  }
 0x287   :  { %442 = vsyncadd [#allocation4], 4294967168 }
 0x288   :  { %257 = vsyncpa [#allocation3], 1 }
 0x289   :  { %258 = vsyncpa [#allocation6], 1 }
 0x28a   :  { %259 = vsyncpa [#allocation4], 1 }

</bundles_post_ra>
